<compile_context>
chip_gen: v6e
topology: v6e:2x2x1
jax: 0.10.0
libtpu: 0.0.40
codegen_flags: <defaults>
</compile_context>

<pallas_src>
import math

import jax
import jax.numpy as jnp
from jax.experimental import pallas as pl
from jax.experimental.pallas import tpu as pltpu


_TM_TARGET = 512     # measured sweet spot for f32 row tiles (>=85% HBM roofline)
_LANE = 128          # lane width: pad output/weight N dim to a multiple of this


def _round_up(x, m):
    return ((x + m - 1) // m) * m


def _bd_kernel(x_ref, wt_ref, b_ref, o_ref):
    # x_ref:  (TM, in_dim)        VMEM  (batch tile)
    # wt_ref: (in_dim, mem_dim_p) VMEM  (pre-transposed, lane-padded weight;
    #                                    resident across all grid steps)
    # b_ref:  (1, mem_dim_p)      VMEM  (lane-padded bias; resident)
    # o_ref:  (TM, mem_dim_p)     VMEM  (lane-dense output tile)
    y = jnp.dot(x_ref[...], wt_ref[...], preferred_element_type=jnp.float32)
    y = y + b_ref[...]
    o_ref[...] = jnp.tanh(y).astype(o_ref.dtype)


def prepare_bd_params(weight, bias):
    """One-time parameter prep (outside the per-call hot path).

    weight: (mem_dim, in_dim) nn.Linear layout
    bias:   (mem_dim,)
    Returns (wt_p, b_p): weight transposed to (in_dim, mem_dim_p) and bias as
    (1, mem_dim_p), with mem_dim_p = mem_dim rounded up to a multiple of 128
    (zero-padded) so the kernel's output last dim is lane-dense.
    """
    mem_dim, in_dim = weight.shape
    mem_dim_p = _round_up(mem_dim, _LANE)
    wt = weight.T.astype(jnp.float32)                       # (in_dim, mem_dim)
    wt_p = jnp.pad(wt, ((0, 0), (0, mem_dim_p - mem_dim)))  # (in_dim, mem_dim_p)
    b_p = jnp.pad(bias.astype(jnp.float32), (0, mem_dim_p - mem_dim))
    b_p = b_p.reshape(1, mem_dim_p)
    return wt_p, b_p


def bd_forward(user, wt_p, b_p, mem_dim):
    """user: (B, in_dim) f32; wt_p: (in_dim, mem_dim_p); b_p: (1, mem_dim_p)."""
    B, in_dim = user.shape
    mem_dim_p = wt_p.shape[1]

    # Batch tile: multiple of 8 sublanes, up to 512 rows; pad B so it divides.
    tm = min(_TM_TARGET, _round_up(B, 8))
    b_pad = _round_up(B, tm)
    if b_pad != B:
        user = jnp.pad(user, ((0, b_pad - B), (0, 0)))

    grid = (b_pad // tm,)

    out_p = pl.pallas_call(
        _bd_kernel,
        out_shape=jax.ShapeDtypeStruct((b_pad, mem_dim_p), jnp.float32),
        grid_spec=pltpu.PrefetchScalarGridSpec(
            num_scalar_prefetch=0,
            grid=grid,
            in_specs=[
                # batch tile marches over the grid
                pl.BlockSpec((tm, in_dim), lambda i: (i, 0)),
                # weight / bias stay resident in VMEM (constant block index)
                pl.BlockSpec((in_dim, mem_dim_p), lambda i: (0, 0)),
                pl.BlockSpec((1, mem_dim_p), lambda i: (0, 0)),
            ],
            out_specs=pl.BlockSpec((tm, mem_dim_p), lambda i: (i, 0)),
        ),
        compiler_params=pltpu.CompilerParams(
            # independent batch tiles -> shard across TCs on v7x megacore
            dimension_semantics=("parallel",),
        ),
    )(user, wt_p, b_p)

    # Drop batch padding and lane padding of the output.
    return out_p[:B, :mem_dim]


def xavier_uniform(key, shape):
    # torch.nn.init.xavier_uniform_ for Linear weight (fan_out, fan_in)
    fan_out, fan_in = shape
    limit = math.sqrt(6.0 / (fan_in + fan_out))
    return jax.random.uniform(key, shape, jnp.float32, -limit, limit)


if __name__ == "__main__":
    key = jax.random.PRNGKey(0)
    k_x, k_w = jax.random.split(key)

    batch, in_dim, mem_dim = 8, 32, 32

    user = jax.random.normal(k_x, (batch, in_dim), jnp.float32)
    weight = xavier_uniform(k_w, (mem_dim, in_dim))   # nn.Linear weight shape
    bias = jnp.zeros((mem_dim,), jnp.float32)         # constant_(bias, 0)

    # One-time parameter preparation (transpose + lane padding hoisted out of
    # the per-call path).
    wt_p, b_p = prepare_bd_params(weight, bias)

    out = bd_forward(user, wt_p, b_p, mem_dim)
    jax.block_until_ready(out)

    # cross-check against plain JAX reference
    ref = jnp.tanh(user @ weight.T + bias)
    assert out.shape == (batch, mem_dim)
    assert jnp.allclose(out, ref, atol=1e-5, rtol=1e-5)

    print("KERNEL_OK")
</pallas_src>

<mosaic_0001>
module attributes {stable_mosaic.version = 11 : i64} {
  func.func @_bd_kernel(%arg0: i32, %arg1: memref<8x32xf32, #tpu.memory_space<vmem>>, %arg2: memref<32x128xf32, #tpu.memory_space<vmem>>, %arg3: memref<1x128xf32, #tpu.memory_space<vmem>>, %arg4: memref<8x128xf32, #tpu.memory_space<vmem>>) attributes {dimension_semantics = [#tpu.dimension_semantics<parallel>], iteration_bounds = array<i64: 1>, scalar_prefetch = 0 : i64, scratch_operands = 0 : i64, tpu.core_type = #tpu.core_type<tc>, window_params = [{transform_indices = @transform_0, window_bounds = array<i64: 8, 32>}, {pipeline_mode = #tpu.pipeline_mode<synchronous>, transform_indices = @transform_1, window_bounds = array<i64: 32, 128>}, {pipeline_mode = #tpu.pipeline_mode<synchronous>, transform_indices = @transform_2, window_bounds = array<i64: 1, 128>}, {transform_indices = @transform_3, window_bounds = array<i64: 8, 128>}]} {
    %c0 = arith.constant 0 : index
    %c0_0 = arith.constant 0 : index
    %0 = vector.load %arg1[%c0, %c0_0] : memref<8x32xf32, #tpu.memory_space<vmem>>, vector<8x32xf32>
    %c0_1 = arith.constant 0 : index
    %c0_2 = arith.constant 0 : index
    %1 = vector.load %arg2[%c0_1, %c0_2] : memref<32x128xf32, #tpu.memory_space<vmem>>, vector<32x128xf32>
    %cst = arith.constant dense<0.000000e+00> : vector<8x128xf32>
    %2 = tpu.matmul %0, %1, %cst {dimension_numbers = #tpu.dot_dimension_numbers<[1], [0], [0], [1], [0, 0, 1, 1], [], []>} : vector<8x32xf32>, vector<32x128xf32>, vector<8x128xf32> -> vector<8x128xf32>
    %c0_3 = arith.constant 0 : index
    %c0_4 = arith.constant 0 : index
    %3 = vector.load %arg3[%c0_3, %c0_4] : memref<1x128xf32, #tpu.memory_space<vmem>>, vector<1x128xf32>
    %4 = vector.broadcast %3 : vector<1x128xf32> to vector<8x128xf32>
    %5 = arith.addf %2, %4 : vector<8x128xf32>
    %6 = math.tanh %5 : vector<8x128xf32>
    %c0_5 = arith.constant 0 : index
    %c0_6 = arith.constant 0 : index
    %7 = vector.load %arg4[%c0_5, %c0_6] : memref<8x128xf32, #tpu.memory_space<vmem>>, vector<8x128xf32>
    tpu.vector_store %arg4[%c0_5, %c0_6], %6 {strides = array<i32>} : memref<8x128xf32, #tpu.memory_space<vmem>>, vector<8x128xf32>,
    return
  }
  func.func @transform_0(%arg0: i32) -> (i32, i32) {
    %c0_i32 = arith.constant 0 : i32
    %c0_i32_0 = arith.constant 0 : i32
    return %arg0, %c0_i32 : i32, i32
  }
  func.func @transform_1(%arg0: i32) -> (i32, i32) {
    %c0_i32 = arith.constant 0 : i32
    %c0_i32_0 = arith.constant 0 : i32
    %c0_i32_1 = arith.constant 0 : i32
    return %c0_i32, %c0_i32_0 : i32, i32
  }
  func.func @transform_2(%arg0: i32) -> (i32, i32) {
    %c0_i32 = arith.constant 0 : i32
    %c0_i32_0 = arith.constant 0 : i32
    %c0_i32_1 = arith.constant 0 : i32
    return %c0_i32, %c0_i32_0 : i32, i32
  }
  func.func @transform_3(%arg0: i32) -> (i32, i32) {
    %c0_i32 = arith.constant 0 : i32
    %c0_i32_0 = arith.constant 0 : i32
    return %arg0, %c0_i32 : i32, i32
  }
}

</mosaic_0001>

<bundles_post_ra>
// kernel: tpu_custom_call.1
= control target key start
LH: loop header
LB: loop body
LE: loop exit
PB: predicated region body
PF: predicated region fallthrough
CT: control target
= control target key end

     0   :  { %8 = vsyncpa [#allocation3], 0  ;;  %s277_s0 = inlined_call_operand.hbm [shape: f32[8,32], index: 0, kind: input, shape index: {}]   ;;  %s278_s1 = inlined_call_operand.hbm [shape: f32[32,128], index: 1, kind: input, shape index: {}]   ;;  %s279_s2 = inlined_call_operand.vmem [shape: f32[1,128], index: 2, kind: input, shape index: {}]   ;;  %s280_s3 = inlined_call_operand.hbm [shape: f32[8,128], index: 3, kind: output, shape index: {}]  }
   0x1   :  { %9 = vsyncpa [#allocation6], 0 }
   0x2   :  { %10 = vsyncpa [#allocation4], 0  ;;  %s238_s12 = smov [#allocation2]   ;;  %s239_s14 = smov [#allocation5]  }
   0x3   :  { %s17_s13 = sshll.u32 %s238_s12, 4  ;;  %s26_s15 = sshll.u32 %s239_s14, 4  ;;  %s18_s13 = int_to_ptr.vmem [resolvable:$true] %s17_s13  ;;  %s27_s15 = int_to_ptr.vmem [resolvable:$true] %s26_s15 }
   0x4   :  { %s180_s16 = scalar_lea.vmem %s18_s13, 128  ;;  %p185_p1 = scmp.lt.s32.totalorder %s18_s13, %s18_s13 }
   0x5   :  { %p181_p0 = scmp.ne.s32.totalorder %s18_s13, %s180_s16  ;;  %p186_p2 = scmp.lt.s32.totalorder %s180_s16, %s180_s16 }
   0x7   :  { %p187_p3 = por %p186_p2, %p185_p1 }
   0x9   :  { %p188_p4 = pnand %p187_p3, %p181_p0 }
   0xb   :  { %191 = shalt.err (!%p188_p4)
}
   0xc   :  { %20 = dma.hbm_to_vmem [thread:$0]  %s277_s0, 128, %s18_s13, [#allocation3]  }
   0xd   :  { %s200_s19 = scalar_lea.vmem %s27_s15, 512  ;;  %p205_p6 = scmp.lt.s32.totalorder %s27_s15, %s27_s15 }
   0xe   :  { %p201_p5 = scmp.ne.s32.totalorder %s27_s15, %s200_s19  ;;  %p206_p7 = scmp.lt.s32.totalorder %s200_s19, %s200_s19 }
  0x10   :  { %p207_p8 = por %p206_p7, %p205_p6 }
  0x12   :  { %p208_p9 = pnand %p207_p8, %p201_p5 }
  0x14   :  { %211 = shalt.err (!%p208_p9)
}
  0x15   :  { %s240_s20 = smov 128   ;;  %s241_s21 = smov 8  }
  0x16   :  { %32 = dma.hbm_to_vmem [thread:$0]  %s278_s1, 512, %s27_s15, [#allocation6], %s240_s20, %s240_s20, %s241_s21  }
  0x17   :  { %232 = dma.done.wait [#allocation3], 128  }
  0x18   :  { %233 = vsyncadd [#allocation3], 4294967168 }
  0x19   :  { %234 = dma.done.wait [#allocation6], 512  }
  0x1a   :  { %235 = vsyncadd [#allocation6], 4294966784  ;;  %v242_v0 = vmov 0.0   ;;  %vm243_vm0 = vmmov 0   ;;  %v45_v1 = vld [vmem:[#allocation5 + $0x18] sm:$0xff]  ;;  %v44_v2 = vld [vmem:[#allocation5 + $0x10] sm:$0xff] }
  0x1b   :  { %152 = vmatprep.subr.mxu0 %v242_v0  ;;  %160 = vmatprep.mubr.msk.f32.mxu0 %vm243_vm0, %v242_v0  ;;  %v43_v3 = vld [vmem:[#allocation5 + $0x8] sm:$0xff]  ;;  %v42_v4 = vld [vmem:[#allocation5] sm:$0xff]  ;;  %v41_v5 = vld [vmem:[#allocation2] sm:$0xff]  ;;  %vm53_vm1 = vcmask 261120   ;;  %s244_s24 = smov [#allocation7]  }
  0x1c   :  { %153 = vmatpush3.msra.mxu0 %v45_v1  ;;  %v145_v6 = vld [vmem:[%s279_s2] ss:$0 sm:$0xff]  ;;  %s135_s25 = sshll.u32 %s244_s24, 4  ;;  %s136_s25 = int_to_ptr.vmem [resolvable:$true] %s135_s25 }
  0x1d   :  { %154 = vmatprep.subr.mxu0 %v242_v0  ;;  %s212_s26 = scalar_lea.vmem %s136_s25, 128  ;;  %p217_p11 = scmp.lt.s32.totalorder %s136_s25, %s136_s25 }
  0x1e   :  { %155 = vmatpush3.msra.mxu0 %v44_v2  ;;  %p213_p10 = scmp.ne.s32.totalorder %s136_s25, %s212_s26  ;;  %p218_p12 = scmp.lt.s32.totalorder %s212_s26, %s212_s26 }
  0x1f   :  { %156 = vmatprep.subr.mxu0 %v242_v0 }
  0x20   :  { %157 = vmatpush3.msra.mxu0 %v43_v3  ;;  %p219_p13 = por %p218_p12, %p217_p11 }
  0x21   :  { %158 = vmatprep.subr.mxu0 %v242_v0 }
  0x22   :  { %159 = vmatpush3.msra.mxu0 %v42_v4  ;;  %p220_p0 = pnand %p219_p13, %p213_p10 }
  0x23   :  { %161 = vmatmul.mubr.msk.f32.vlgmr.msra.gmra.mxu0 %vm53_vm1, %v41_v5 }
  0xe3   :  { %v123_v7 = vpop.f32.mrf.mxu0 }
  0xe4   :  { %v124_v8 = vadd.f32 %v145_v6, %v123_v7 }
  0xe5   :  { %v162_v9 = vpop.f32.mrf.mxu0 }
  0xe6   :  { %170 = vtanh.f32 %v124_v8 }
  0xf3   :  { %v171_v10 = vpop.eup %170 }
  0xf4   :  { %128 = vst [vmem:[#allocation7] sm:$0xff] %v171_v10 }
  0xf5   :  { %223 = shalt.err (!%p220_p0)
}
  0xf6   :  { %138 = dma.vmem_to_hbm [thread:$0]  %s136_s25, 128, %s280_s3, [#allocation4]  }
  0xf7   :  { %236 = dma.done.wait [#allocation4], 128  }
  0xf8   :  { %237 = vsyncadd [#allocation4], 4294967168 }
  0xf9   :  { %142 = vsyncpa [#allocation3], 1 }
  0xfa   :  { %143 = vsyncpa [#allocation6], 1 }
  0xfb   :  { %144 = vsyncpa [#allocation4], 1 }

</bundles_post_ra>
